<compile_context>
chip_gen: v7x
topology: tpu7x:2x2x1
jax: 0.10.0
libtpu: 0.0.40
codegen_flags: <defaults>
</compile_context>

<pallas_src>
import functools
import math

import jax
import jax.numpy as jnp
from jax import lax
from jax.experimental import pallas as pl
from jax.experimental.pallas import tpu as pltpu

LN_EPS = 1e-5  # PyTorch F.layer_norm default


def _encoder_block_kernel(x_ref, w1_ref, b1_ref, w2_ref, b2_ref,
                          seg_ref, segt_ref, o_ref, *, seq_len):
    # x_ref:    (Cin, T)    T = Bn * L  (batch folded into the lane axis)
    # w1_ref:   (Fw, Cin)   b1_ref: (Fw, 1)
    # w2_ref:   (Emb, Fw)   b2_ref: (Emb, 1)
    # seg_ref:  (T, Bn)     seg[j, b] = 1.0 iff lane j belongs to batch-slot b
    # segt_ref: (Bn, T)     transpose of seg (so every dot is a plain NN matmul)
    # o_ref:    (Emb, T)
    x = x_ref[...]

    # f1 / f2: pointwise Conv1d == channel matmuls on the MXU, f32 accumulate.
    h = jnp.dot(w1_ref[...], x, preferred_element_type=jnp.float32) + b1_ref[...]
    h = jnp.maximum(h, 0.0)
    y = jnp.dot(w2_ref[...], h, preferred_element_type=jnp.float32) + b2_ref[...]

    # One-pass LayerNorm statistics over each L-lane segment via segment-matmul
    # (keeps the reduction lane-dense; no reshape to a 16-wide minor dim).
    seg = seg_ref[...]
    inv_l = 1.0 / float(seq_len)
    sums = jnp.dot(y, seg, precision=lax.Precision.HIGHEST,
                   preferred_element_type=jnp.float32)               # (Emb, Bn)
    sumsq = jnp.dot(y * y, seg, precision=lax.Precision.HIGHEST,
                    preferred_element_type=jnp.float32)              # (Emb, Bn)
    mean = sums * inv_l
    var = sumsq * inv_l - mean * mean
    inv_std = lax.rsqrt(var + LN_EPS)                                # EUP slot

    # Broadcast the per-(emb, batch) stats back across each L-lane segment.
    segt = segt_ref[...]
    mean_b = jnp.dot(mean, segt, precision=lax.Precision.HIGHEST,
                     preferred_element_type=jnp.float32)             # (Emb, T)
    inv_b = jnp.dot(inv_std, segt, precision=lax.Precision.HIGHEST,
                    preferred_element_type=jnp.float32)              # (Emb, T)

    o_ref[...] = ((y - mean_b) * inv_b).astype(o_ref.dtype)


def _choose_batch_block(n, l, target_lanes=512, max_lanes=4096):
    """Pick (Bn, N_pad): Bn batch rows per tile with Bn*L % 128 == 0 (lane-dense
    stores), ~target_lanes lanes per tile, and N_pad = smallest multiple of Bn
    covering N.  Falls back to the full (unpadded) batch when L is pathological."""
    unit = 128 // math.gcd(l, 128)          # smallest Bn with (Bn*L) % 128 == 0
    if unit * l > max_lanes:
        return n, n                          # block == full array dims (always legal)
    bn = max(unit, (max(target_lanes // l, 1) // unit) * unit)
    n_cover = -(-n // unit) * unit           # N rounded up to a multiple of `unit`
    bn = min(bn, n_cover)
    n_pad = -(-n // bn) * bn
    return bn, n_pad


def koikoi_encoder_block0(x, w1, b1, w2, b2, *, target_lanes=512):
    """x: (N, nInput, L) float32 -> (L, N, nEmb) float32 (KoiKoiEncoderBlock0)."""
    N, Cin, L = x.shape
    Fw = w1.shape[0]
    Emb = w2.shape[0]

    Bn, N_pad = _choose_batch_block(N, L, target_lanes)
    T = Bn * L                       # lanes per tile
    grid = (N_pad // Bn,)

    # Input-side layout plumbing: fold batch into the lane axis (pad batch with
    # zeros so every tile is a multiple of 128 lanes -> unmasked stores).
    if N_pad != N:
        x = jnp.pad(x, ((0, N_pad - N), (0, 0), (0, 0)))
    x_cl = jnp.transpose(x, (1, 0, 2)).reshape(Cin, N_pad * L)    # (Cin, N_pad*L)

    b1_2d = b1.reshape(Fw, 1)
    b2_2d = b2.reshape(Emb, 1)

    # 0/1 segment matrix mapping tile lanes -> local batch slot (identical for
    # every grid step) plus its transpose; both stay VMEM-resident.
    seg = (jnp.arange(T)[:, None] // L
           == jnp.arange(Bn)[None, :]).astype(jnp.float32)       # (T, Bn)
    seg_t = seg.T                                                # (Bn, T)

    kernel = functools.partial(_encoder_block_kernel, seq_len=L)

    y_cl = pl.pallas_call(
        kernel,
        out_shape=jax.ShapeDtypeStruct((Emb, N_pad * L), jnp.float32),
        grid_spec=pltpu.PrefetchScalarGridSpec(
            num_scalar_prefetch=0,
            grid=grid,
            in_specs=[
                pl.BlockSpec((Cin, T), lambda i: (0, i)),        # activations
                pl.BlockSpec((Fw, Cin), lambda i: (0, 0)),       # W1 (resident)
                pl.BlockSpec((Fw, 1), lambda i: (0, 0)),         # b1 (resident)
                pl.BlockSpec((Emb, Fw), lambda i: (0, 0)),       # W2 (resident)
                pl.BlockSpec((Emb, 1), lambda i: (0, 0)),        # b2 (resident)
                pl.BlockSpec((T, Bn), lambda i: (0, 0)),         # seg (resident)
                pl.BlockSpec((Bn, T), lambda i: (0, 0)),         # seg^T (resident)
            ],
            out_specs=pl.BlockSpec((Emb, T), lambda i: (0, i)),
        ),
        compiler_params=pltpu.CompilerParams(
            dimension_semantics=("parallel",),   # megacore split on v7x
        ),
    )(x_cl, w1, b1_2d, w2, b2_2d, seg, seg_t)

    # permute(2, 0, 1): (Emb, N_pad*L) -> (L, N, Emb).  Kept as wrapper glue
    # since with Emb < 128 an in-kernel (L, N, Emb) store would be lane-masked.
    y = y_cl.reshape(Emb, N_pad, L)[:, :N, :]
    return jnp.transpose(y, (2, 1, 0))


def _reference(x, w1, b1, w2, b2):
    # Pure-JAX reference mirroring the PyTorch module.
    h = jnp.einsum('fc,ncl->nfl', w1, x) + b1[None, :, None]
    h = jnp.maximum(h, 0.0)
    y = jnp.einsum('ef,nfl->nel', w2, h) + b2[None, :, None]
    mean = jnp.mean(y, axis=-1, keepdims=True)
    var = jnp.mean((y - mean) ** 2, axis=-1, keepdims=True)
    y = (y - mean) / jnp.sqrt(var + LN_EPS)
    return jnp.transpose(y, (2, 0, 1))


if __name__ == "__main__":
    # Small shapes consistent with the module's forward.
    N, nInput, L = 2, 8, 16
    nFw, nEmb = 64, 32

    key = jax.random.PRNGKey(0)
    kx, k1, kb1, k2, kb2 = jax.random.split(key, 5)

    x = jax.random.normal(kx, (N, nInput, L), dtype=jnp.float32)
    # Deterministic synthetic parameters (Conv1d k=1 weights squeezed to 2D).
    w1 = jax.random.normal(k1, (nFw, nInput), dtype=jnp.float32) * 0.1
    b1 = jax.random.normal(kb1, (nFw,), dtype=jnp.float32) * 0.1
    w2 = jax.random.normal(k2, (nEmb, nFw), dtype=jnp.float32) * 0.1
    b2 = jax.random.normal(kb2, (nEmb,), dtype=jnp.float32) * 0.1

    out = koikoi_encoder_block0(x, w1, b1, w2, b2)
    out = jax.block_until_ready(out)

    ref = _reference(x, w1, b1, w2, b2)
    assert out.shape == (L, N, nEmb), out.shape
    assert jnp.allclose(out, ref, atol=1e-4, rtol=1e-4), "mismatch vs reference"

    print("KERNEL_OK")
</pallas_src>

<mosaic_0001>
module attributes {stable_mosaic.version = 11 : i64} {
  func.func @_encoder_block_kernel(%arg0: i32, %arg1: memref<8x128xf32, #tpu.memory_space<vmem>>, %arg2: memref<64x8xf32, #tpu.memory_space<vmem>>, %arg3: memref<64x1xf32, #tpu.memory_space<vmem>>, %arg4: memref<32x64xf32, #tpu.memory_space<vmem>>, %arg5: memref<32x1xf32, #tpu.memory_space<vmem>>, %arg6: memref<128x8xf32, #tpu.memory_space<vmem>>, %arg7: memref<8x128xf32, #tpu.memory_space<vmem>>, %arg8: memref<32x128xf32, #tpu.memory_space<vmem>>) attributes {dimension_semantics = [#tpu.dimension_semantics<parallel>], iteration_bounds = array<i64: 1>, scalar_prefetch = 0 : i64, scratch_operands = 0 : i64, tpu.core_type = #tpu.core_type<tc>, window_params = [{transform_indices = @transform_0, window_bounds = array<i64: 8, 128>}, {pipeline_mode = #tpu.pipeline_mode<synchronous>, transform_indices = @transform_1, window_bounds = array<i64: 64, 8>}, {pipeline_mode = #tpu.pipeline_mode<synchronous>, transform_indices = @transform_2, window_bounds = array<i64: 64, 1>}, {pipeline_mode = #tpu.pipeline_mode<synchronous>, transform_indices = @transform_3, window_bounds = array<i64: 32, 64>}, {pipeline_mode = #tpu.pipeline_mode<synchronous>, transform_indices = @transform_4, window_bounds = array<i64: 32, 1>}, {pipeline_mode = #tpu.pipeline_mode<synchronous>, transform_indices = @transform_5, window_bounds = array<i64: 128, 8>}, {pipeline_mode = #tpu.pipeline_mode<synchronous>, transform_indices = @transform_6, window_bounds = array<i64: 8, 128>}, {transform_indices = @transform_7, window_bounds = array<i64: 32, 128>}]} {
    %c0 = arith.constant 0 : index
    %c0_0 = arith.constant 0 : index
    %0 = vector.load %arg1[%c0, %c0_0] : memref<8x128xf32, #tpu.memory_space<vmem>>, vector<8x128xf32>
    %c0_1 = arith.constant 0 : index
    %c0_2 = arith.constant 0 : index
    %1 = vector.load %arg2[%c0_1, %c0_2] : memref<64x8xf32, #tpu.memory_space<vmem>>, vector<64x8xf32>
    %cst = arith.constant dense<0.000000e+00> : vector<64x128xf32>
    %2 = tpu.matmul %1, %0, %cst {dimension_numbers = #tpu.dot_dimension_numbers<[1], [0], [0], [1], [0, 0, 1, 1], [], []>} : vector<64x8xf32>, vector<8x128xf32>, vector<64x128xf32> -> vector<64x128xf32>
    %c0_3 = arith.constant 0 : index
    %c0_4 = arith.constant 0 : index
    %3 = vector.load %arg3[%c0_3, %c0_4] : memref<64x1xf32, #tpu.memory_space<vmem>>, vector<64x1xf32>
    %4 = vector.broadcast %3 : vector<64x1xf32> to vector<64x128xf32>
    %5 = arith.addf %2, %4 : vector<64x128xf32>
    %cst_5 = arith.constant 0.000000e+00 : f32
    %6 = vector.broadcast %cst_5 : f32 to vector<64x128xf32>
    %7 = arith.maximumf %5, %6 : vector<64x128xf32>
    %c0_6 = arith.constant 0 : index
    %c0_7 = arith.constant 0 : index
    %8 = vector.load %arg4[%c0_6, %c0_7] : memref<32x64xf32, #tpu.memory_space<vmem>>, vector<32x64xf32>
    %cst_8 = arith.constant dense<0.000000e+00> : vector<32x128xf32>
    %9 = tpu.matmul %8, %7, %cst_8 {dimension_numbers = #tpu.dot_dimension_numbers<[1], [0], [0], [1], [0, 0, 1, 1], [], []>} : vector<32x64xf32>, vector<64x128xf32>, vector<32x128xf32> -> vector<32x128xf32>
    %c0_9 = arith.constant 0 : index
    %c0_10 = arith.constant 0 : index
    %10 = vector.load %arg5[%c0_9, %c0_10] : memref<32x1xf32, #tpu.memory_space<vmem>>, vector<32x1xf32>
    %11 = vector.broadcast %10 : vector<32x1xf32> to vector<32x128xf32>
    %12 = arith.addf %9, %11 : vector<32x128xf32>
    %c0_11 = arith.constant 0 : index
    %c0_12 = arith.constant 0 : index
    %13 = vector.load %arg6[%c0_11, %c0_12] : memref<128x8xf32, #tpu.memory_space<vmem>>, vector<128x8xf32>
    %cst_13 = arith.constant dense<0.000000e+00> : vector<32x8xf32>
    %14 = tpu.matmul %12, %13, %cst_13 {dimension_numbers = #tpu.dot_dimension_numbers<[1], [0], [0], [1], [0, 0, 1, 1], [], []>, precision = #tpu.contract_precision<fp32>} : vector<32x128xf32>, vector<128x8xf32>, vector<32x8xf32> -> vector<32x8xf32>
    %15 = arith.mulf %12, %12 : vector<32x128xf32>
    %cst_14 = arith.constant dense<0.000000e+00> : vector<32x8xf32>
    %16 = tpu.matmul %15, %13, %cst_14 {dimension_numbers = #tpu.dot_dimension_numbers<[1], [0], [0], [1], [0, 0, 1, 1], [], []>, precision = #tpu.contract_precision<fp32>} : vector<32x128xf32>, vector<128x8xf32>, vector<32x8xf32> -> vector<32x8xf32>
    %cst_15 = arith.constant 6.250000e-02 : f32
    %17 = vector.broadcast %cst_15 : f32 to vector<32x8xf32>
    %18 = arith.mulf %14, %17 : vector<32x8xf32>
    %cst_16 = arith.constant 6.250000e-02 : f32
    %19 = vector.broadcast %cst_16 : f32 to vector<32x8xf32>
    %20 = arith.mulf %16, %19 : vector<32x8xf32>
    %21 = arith.mulf %18, %18 : vector<32x8xf32>
    %22 = arith.subf %20, %21 : vector<32x8xf32>
    %cst_17 = arith.constant 9.99999974E-6 : f32
    %23 = vector.broadcast %cst_17 : f32 to vector<32x8xf32>
    %24 = arith.addf %22, %23 : vector<32x8xf32>
    %25 = math.rsqrt %24 : vector<32x8xf32>
    %c0_18 = arith.constant 0 : index
    %c0_19 = arith.constant 0 : index
    %26 = vector.load %arg7[%c0_18, %c0_19] : memref<8x128xf32, #tpu.memory_space<vmem>>, vector<8x128xf32>
    %cst_20 = arith.constant dense<0.000000e+00> : vector<32x128xf32>
    %27 = tpu.matmul %18, %26, %cst_20 {dimension_numbers = #tpu.dot_dimension_numbers<[1], [0], [0], [1], [0, 0, 1, 1], [], []>, precision = #tpu.contract_precision<fp32>} : vector<32x8xf32>, vector<8x128xf32>, vector<32x128xf32> -> vector<32x128xf32>
    %cst_21 = arith.constant dense<0.000000e+00> : vector<32x128xf32>
    %28 = tpu.matmul %25, %26, %cst_21 {dimension_numbers = #tpu.dot_dimension_numbers<[1], [0], [0], [1], [0, 0, 1, 1], [], []>, precision = #tpu.contract_precision<fp32>} : vector<32x8xf32>, vector<8x128xf32>, vector<32x128xf32> -> vector<32x128xf32>
    %29 = arith.subf %12, %27 : vector<32x128xf32>
    %30 = arith.mulf %29, %28 : vector<32x128xf32>
    %c0_22 = arith.constant 0 : index
    %c0_23 = arith.constant 0 : index
    %31 = vector.load %arg8[%c0_22, %c0_23] : memref<32x128xf32, #tpu.memory_space<vmem>>, vector<32x128xf32>
    tpu.vector_store %arg8[%c0_22, %c0_23], %30 {strides = array<i32>} : memref<32x128xf32, #tpu.memory_space<vmem>>, vector<32x128xf32>,
    return
  }
  func.func @transform_0(%arg0: i32) -> (i32, i32) {
    %c0_i32 = arith.constant 0 : i32
    %c0_i32_0 = arith.constant 0 : i32
    return %c0_i32, %arg0 : i32, i32
  }
  func.func @transform_1(%arg0: i32) -> (i32, i32) {
    %c0_i32 = arith.constant 0 : i32
    %c0_i32_0 = arith.constant 0 : i32
    %c0_i32_1 = arith.constant 0 : i32
    return %c0_i32, %c0_i32_0 : i32, i32
  }
  func.func @transform_2(%arg0: i32) -> (i32, i32) {
    %c0_i32 = arith.constant 0 : i32
    %c0_i32_0 = arith.constant 0 : i32
    %c0_i32_1 = arith.constant 0 : i32
    return %c0_i32, %c0_i32_0 : i32, i32
  }
  func.func @transform_3(%arg0: i32) -> (i32, i32) {
    %c0_i32 = arith.constant 0 : i32
    %c0_i32_0 = arith.constant 0 : i32
    %c0_i32_1 = arith.constant 0 : i32
    return %c0_i32, %c0_i32_0 : i32, i32
  }
  func.func @transform_4(%arg0: i32) -> (i32, i32) {
    %c0_i32 = arith.constant 0 : i32
    %c0_i32_0 = arith.constant 0 : i32
    %c0_i32_1 = arith.constant 0 : i32
    return %c0_i32, %c0_i32_0 : i32, i32
  }
  func.func @transform_5(%arg0: i32) -> (i32, i32) {
    %c0_i32 = arith.constant 0 : i32
    %c0_i32_0 = arith.constant 0 : i32
    %c0_i32_1 = arith.constant 0 : i32
    return %c0_i32, %c0_i32_0 : i32, i32
  }
  func.func @transform_6(%arg0: i32) -> (i32, i32) {
    %c0_i32 = arith.constant 0 : i32
    %c0_i32_0 = arith.constant 0 : i32
    %c0_i32_1 = arith.constant 0 : i32
    return %c0_i32, %c0_i32_0 : i32, i32
  }
  func.func @transform_7(%arg0: i32) -> (i32, i32) {
    %c0_i32 = arith.constant 0 : i32
    %c0_i32_0 = arith.constant 0 : i32
    return %c0_i32, %arg0 : i32, i32
  }
}

</mosaic_0001>

<bundles_post_ra>
// kernel: tpu_custom_call.1
= control target key start
LH: loop header
LB: loop body
LE: loop exit
PB: predicated region body
PF: predicated region fallthrough
CT: control target
= control target key end

     0   :  { %vm84_vm0 = vcmask 64512   ;;  %v4574_v4 = vmov 0   ;;  %s5420_s0 = inlined_call_operand.vmem [shape: f32[8,128], index: 0, kind: input, shape index: {}]   ;;  %s5421_s1 = inlined_call_operand.vmem [shape: f32[64,8], index: 1, kind: input, shape index: {}]   ;;  %s5422_s2 = inlined_call_operand.vmem [shape: f32[64,1], index: 2, kind: input, shape index: {}]   ;;  %s5423_s3 = inlined_call_operand.vmem [shape: f32[32,64], index: 3, kind: input, shape index: {}]   ;;  %s5424_s4 = inlined_call_operand.vmem [shape: f32[32,1], index: 4, kind: input, shape index: {}]   ;;  %s5425_s5 = inlined_call_operand.vmem [shape: f32[128,8], index: 5, kind: input, shape index: {}]   ;;  %s5426_s6 = inlined_call_operand.vmem [shape: f32[8,128], index: 6, kind: input, shape index: {}]   ;;  %s5427_s7 = inlined_call_operand.hbm [shape: f32[32,128], index: 7, kind: output, shape index: {}]  }
   0x1   :  { %v27_v0 = vld [vmem:[%s5420_s0] sm:$0xff]  ;;  %v29_v2 = vld [vmem:[%s5421_s1 + $0x8] sm:$0xff]  ;;  %v30_v3 = vld [vmem:[%s5421_s1 + $0x10] sm:$0xff]  ;;  %4540 = vset.pattern.permute.xlu0 %v4574_v4  ;;  %4541 = vset.pattern.permute.xlu1 %v4574_v4 }
   0x2   :  { %v28_v1 = vld [vmem:[%s5421_s1] sm:$0xff]  ;;  %3468 = vmatprep.subr.mxu0 %v27_v0  ;;  %v38_v6 = vld [vmem:[%s5422_s2 + $0x10] sm:$0xff]  ;;  %v31_v7 = vld [vmem:[%s5421_s1 + $0x18] sm:$0xff] }
   0x3   :  { %3470 = vmatprep.mubr.msk.f32.mxu0 %vm84_vm0, %v28_v1  ;;  %3469 = vmatpush3.msra.mxu0 %v27_v0  ;;  %v36_v5 = vld [vmem:[%s5422_s2] sm:$0xff]  ;;  %v37_v9 = vld [vmem:[%s5422_s2 + $0x8] sm:$0xff]  ;;  %v39_v10 = vld [vmem:[%s5422_s2 + $0x18] sm:$0xff] }
   0x4   :  { %3471 = vmatmul.mubr.msk.f32.vlgmr.msra.gmra.mrb[0].mxu0 %vm84_vm0, %v29_v2  ;;  %46 = vperm.xlu0 %4540, %v36_v5   ;;  %v32_v8 = vld [vmem:[%s5421_s1 + $0x20] sm:$0xff] }
   0x5   :  { %3473 = vmatprep.mubr.msk.f32.mxu0 %vm84_vm0, %v30_v3  ;;  %56 = vperm.xlu1 %4541, %v38_v6  }
   0x8   :  { %3474 = vmatmul.mubr.msk.f32.gmra.mrb[2].mxu0 %vm84_vm0, %v31_v7 }
   0x9   :  { %12 = vsyncpa [#allocation3], 0  ;;  %3476 = vmatprep.mubr.msk.f32.mxu0 %vm84_vm0, %v32_v8  ;;  %v33_v11 = vld [vmem:[%s5421_s1 + $0x28] sm:$0xff]  ;;  %51 = vperm.xlu0 %4540, %v37_v9   ;;  %v34_v12 = vld [vmem:[%s5421_s1 + $0x30] sm:$0xff]  ;;  %vm250_vm1 = vcmask 523264  }
   0xa   :  { %61 = vperm.xlu1 %4541, %v39_v10   ;;  %v40_v13 = vld [vmem:[%s5422_s2 + $0x20] sm:$0xff]  ;;  %v41_v14 = vld [vmem:[%s5422_s2 + $0x28] sm:$0xff]  ;;  %v35_v15 = vld [vmem:[%s5421_s1 + $0x38] sm:$0xff] }
   0xb   :  { %v42_v16 = vld [vmem:[%s5422_s2 + $0x30] sm:$0xff]  ;;  %v43_v17 = vld [vmem:[%s5422_s2 + $0x38] sm:$0xff]  ;;  %v226_v18 = vld [vmem:[%s5424_s4] sm:$0xff] }
   0xc   :  { %3477 = vmatmul.mubr.msk.f32.gmra.mrb[4].mxu0 %vm84_vm0, %v33_v11  ;;  %v227_v19 = vld [vmem:[%s5424_s4 + $0x8] sm:$0xff]  ;;  %v228_v20 = vld [vmem:[%s5424_s4 + $0x10] sm:$0xff]  ;;  %v229_v21 = vld [vmem:[%s5424_s4 + $0x18] sm:$0xff] }
   0xd   :  { %3479 = vmatprep.mubr.msk.f32.mxu0 %vm84_vm0, %v34_v12  ;;  %66 = vperm.xlu0 %4540, %v40_v13   ;;  %v222_v22 = vld [vmem:[%s5423_s3] sm:$0xff]  ;;  %v4701_v24 = vld [vmem:[%s5425_s5 + $0x8] sm:$0xff]  ;;  %v4706_v25 = vld [vmem:[%s5425_s5 + $0x10] sm:$0xff] }
   0xe   :  { %71 = vperm.xlu1 %4541, %v41_v14   ;;  %3498 = vmatprep.mubr.msk.f32.mxu1 %vm250_vm1, %v222_v22  ;;  %v4696_v23 = vld [vmem:[%s5425_s5] sm:$0xff]  ;;  %v368_v27 = vand.u32 4294901760, %v4701_v24  ;;  %v4713_v28 = vld [vmem:[%s5425_s5 + $0x18] sm:$0xff]  ;;  %v371_v29 = vand.u32 4294901760, %v4706_v25  ;;  %v4724_v31 = vld [vmem:[%s5425_s5 + $0x28] sm:$0xff] }
   0xf   :  { %v365_v26 = vand.u32 4294901760, %v4696_v23  ;;  %v4719_v30 = vld [vmem:[%s5425_s5 + $0x20] sm:$0xff]  ;;  %v374_v32 = vand.u32 4294901760, %v4713_v28  ;;  %v380_v35 = vand.u32 4294901760, %v4724_v31  ;;  %v4745_v37 = vld [vmem:[%s5425_s5 + $0x30] sm:$0xff]  ;;  %v4750_v38 = vld [vmem:[%s5425_s5 + $0x38] sm:$0xff] }
  0x10   :  { %3480 = vmatmul.mubr.msk.f32.gmra.mrb[6].mxu0 %vm84_vm0, %v35_v15  ;;  %v377_v34 = vand.u32 4294901760, %v4719_v30  ;;  %v383_v40 = vand.u32 4294901760, %v4745_v37  ;;  %v386_v41 = vand.u32 4294901760, %v4750_v38  ;;  %v4765_v42 = vld [vmem:[%s5425_s5 + $0x40] sm:$0xff]  ;;  %v4770_v43 = vld [vmem:[%s5425_s5 + $0x48] sm:$0xff]  ;;  %v225_v22 = vld [vmem:[%s5423_s3 + $0x18] sm:$0xff] }
  0x11   :  { %76 = vperm.xlu0 %4540, %v42_v16   ;;  %v4731_v33 = vpack.c.bf16 %v368_v27, %v365_v26  ;;  %v4739_v36 = vpack.c.bf16 %v374_v32, %v371_v29  ;;  %v389_v45 = vand.u32 4294901760, %v4765_v42  ;;  %v392_v46 = vand.u32 4294901760, %v4770_v43 }
  0x12   :  { %81 = vperm.xlu1 %4541, %v43_v17   ;;  %v4758_v39 = vpack.c.bf16 %v380_v35, %v377_v34  ;;  %v4778_v44 = vpack.c.bf16 %v386_v41, %v383_v40 }
  0x13   :  { %4073 = vmatprep.subr.bf16.mxu0 %v4731_v33  ;;  %v4788_v47 = vpack.c.bf16 %v392_v46, %v389_v45 }
  0x14   :  { %4075 = vmatpush3.bf16.msra.mxu0 %v4731_v33 }
  0x15   :  { %232 = vperm.xlu0 %4540, %v226_v18   ;;  %4077 = vmatprep.subr.bf16.mxu0 %v4739_v36 }
  0x16   :  { %237 = vperm.xlu1 %4541, %v227_v19  }
  0x18   :  { %4079 = vmatpush3.bf16.msra.mxu0 %v4739_v36 }
  0x19   :  { %242 = vperm.xlu0 %4540, %v228_v20   ;;  %4081 = vmatprep.subr.bf16.mxu0 %v4758_v39  ;;  %v223_v20 = vld [vmem:[%s5423_s3 + $0x8] sm:$0xff] }
  0x1a   :  { %247 = vperm.xlu1 %4541, %v229_v21   ;;  %v224_v21 = vld [vmem:[%s5423_s3 + $0x10] sm:$0xff] }
  0x1c   :  { %4083 = vmatpush3.bf16.msra.mxu0 %v4758_v39 }
  0x1d   :  { %4085 = vmatprep.subr.bf16.mxu0 %v4778_v44 }
  0x20   :  { %4087 = vmatpush3.bf16.msra.mxu0 %v4778_v44 }
  0x21   :  { %4089 = vmatprep.subr.bf16.mxu0 %v4788_v47 }
  0x24   :  { %4091 = vmatpush3.bf16.msra.mxu0 %v4788_v47 }
  0x83   :  { %v47_v48 = vpop.permute.xlu0 %46 }
  0x84   :  { %v57_v49 = vpop.permute.xlu1 %56 }
  0x88   :  { %v52_v50 = vpop.permute.xlu0 %51 }
  0x89   :  { %v62_v51 = vpop.permute.xlu1 %61 }
  0x8c   :  { %v67_v0 = vpop.permute.xlu0 %66 }
  0x8d   :  { %v72_v61 = vpop.permute.xlu1 %71 }
  0x90   :  { %v77_v12 = vpop.permute.xlu0 %76 }
  0x91   :  { %v82_v9 = vpop.permute.xlu1 %81 }
  0xd7   :  { %v3472_v52 = vpop.f32.mrb[0].mxu0 }
  0xd8   :  { %v181_v53 = vadd.f32 %v3472_v52, %v52_v50  ;;  %v175_v54 = vpop.f32.mrb[1].mxu0 }
  0xd9   :  { %v176_v55 = vadd.f32 %v175_v54, %v47_v48  ;;  %v358_v48 = vld [vmem:[%s5425_s5 + $0x50] sm:$0xff]  ;;  %v361_v54 = vld [vmem:[%s5425_s5 + $0x68] sm:$0xff] }
  0xda   :  { %v215_v56 = vmax.f32 %v181_v53, 0.0  ;;  %v395_v50 = vand.u32 4294901760, %v358_v48  ;;  %v360_v53 = vld [vmem:[%s5425_s5 + $0x60] sm:$0xff] }
  0xdb   :  { %v214_v57 = vmax.f32 %v176_v55, 0.0  ;;  %v3475_v58 = vpop.f32.mrb[2].mxu0  ;;  %v401_v55 = vand.u32 4294901760, %v360_v53 }
  0xdc   :  { %v191_v59 = vadd.f32 %v3475_v58, %v62_v51  ;;  %v185_v60 = vpop.f32.mrb[3].mxu0  ;;  %v4838_v58 = vsub.f32 %v4696_v23, %v365_v26 }
  0xdd   :  { %v186_v62 = vadd.f32 %v185_v60, %v57_v49  ;;  %v4056_v63 = vpack.c.bf16 %v215_v56, %v214_v57  ;;  %v359_v49 = vld [vmem:[%s5425_s5 + $0x58] sm:$0xff]  ;;  %v404_v56 = vand.u32 4294901760, %v361_v54  ;;  %v362_v60 = vld [vmem:[%s5425_s5 + $0x70] sm:$0xff] }
  0xde   :  { %v217_v1 = vmax.f32 %v191_v59, 0.0  ;;  %v398_v51 = vand.u32 4294901760, %v359_v49  ;;  %v4843_v59 = vsub.f32 %v4701_v24, %v368_v27  ;;  %v5441_v26 = vand.u32 4294901760, %v4838_v58 }
  0xdf   :  { %v216_v2 = vmax.f32 %v186_v62, 0.0  ;;  %v3478_v3 = vpop.f32.mrb[4].mxu0  ;;  %4057 = vmatprep.subr.bf16.mxu1 %v4056_v63  ;;  %v4833_v57 = vpack.c.bf16 %v404_v56, %v401_v55  ;;  %v407_v62 = vand.u32 4294901760, %v362_v60 }
  0xe0   :  { %v201_v4 = vadd.f32 %v3478_v3, %v72_v61  ;;  %v195_v5 = vpop.f32.mrb[5].mxu0  ;;  %4059 = vmatpush3.bf16.msra.mxu1 %v4056_v63  ;;  %v4821_v52 = vpack.c.bf16 %v398_v51, %v395_v50  ;;  %v363_v61 = vld [vmem:[%s5425_s5 + $0x78] sm:$0xff]  ;;  %v5440_v63 = vand.u32 4294901760, %v4843_v59  ;;  %v489_v27 = vsub.f32 %v4838_v58, %v5441_v26 }
  0xe1   :  { %v4060_v6 = vpack.c.bf16 %v217_v1, %v216_v2  ;;  %v196_v7 = vadd.f32 %v195_v5, %v67_v0  ;;  %v410_v23 = vand.u32 4294901760, %v363_v61  ;;  %v4875_v5 = vsub.f32 %v359_v49, %v398_v51 }
  0xe2   :  { %v219_v8 = vmax.f32 %v201_v4, 0.0  ;;  %4093 = vmatprep.subr.bf16.mxu0 %v4821_v52  ;;  %v496_v0 = vsub.f32 %v4843_v59, %v5440_v63  ;;  %v490_v1 = vand.u32 4294901760, %v489_v27  ;;  %v4873_v4 = vsub.f32 %v358_v48, %v395_v50 }
  0xe3   :  { %v218_v10 = vmax.f32 %v196_v7, 0.0  ;;  %v3481_v11 = vpop.f32.mrb[6].mxu0  ;;  %4061 = vmatprep.subr.bf16.mxu1 %v4060_v6  ;;  %4095 = vmatpush3.bf16.msra.mxu0 %v4821_v52  ;;  %v4857_v24 = vpack.c.bf16 %v410_v23, %v407_v62  ;;  %v5432_v7 = vand.u32 4294901760, %v4875_v5  ;;  %v4934_v27 = vsub.f32 %v4706_v25, %v371_v29 }
  0xe4   :  { %v211_v13 = vadd.f32 %v3481_v11, %v82_v9  ;;  %v205_v14 = vpop.f32.mrb[7].mxu0  ;;  %4063 = vmatpush3.bf16.msra.mxu1 %v4060_v6  ;;  %4097 = vmatprep.subr.bf16.mxu0 %v4833_v57  ;;  %v497_v2 = vand.u32 4294901760, %v496_v0  ;;  %v5433_v6 = vand.u32 4294901760, %v4873_v4  ;;  %v4887_v11 = vsub.f32 %v361_v54, %v404_v56 }
  0xe5   :  { %v4064_v15 = vpack.c.bf16 %v219_v8, %v218_v10  ;;  %v206_v16 = vadd.f32 %v205_v14, %v77_v12  ;;  %v566_v9 = vsub.f32 %v4875_v5, %v5432_v7  ;;  %v4885_v10 = vsub.f32 %v360_v53, %v401_v55 }
  0xe6   :  { %v221_v17 = vmax.f32 %v211_v13, 0.0  ;;  %v4869_v3 = vpack.c.bf16 %v497_v2, %v490_v1  ;;  %v559_v8 = vsub.f32 %v4873_v4, %v5433_v6  ;;  %5456 = vst [vmem:[#allocation6_spill] sm:$0xff] %v4887_v11  ;;  %v4939_v0 = vsub.f32 %v4713_v28, %v374_v32 }
  0xe7   :  { %v220_v18 = vmax.f32 %v206_v16, 0.0  ;;  %4065 = vmatprep.subr.bf16.mxu1 %v4064_v15  ;;  %4099 = vmatpush3.bf16.msra.mxu0 %v4833_v57  ;;  %5455 = vst [vmem:[#allocation5_spill] sm:$0xff] %v4885_v10  ;;  %v567_v13 = vand.u32 4294901760, %v566_v9  ;;  %v5431_v14 = vand.u32 4294901760, %v4885_v10  ;;  %v5439_v1 = vand.u32 4294901760, %v4934_v27 }
  0xe8   :  { %4067 = vmatpush3.bf16.msra.mxu1 %v4064_v15  ;;  %4101 = vmatprep.subr.bf16.mxu0 %v4857_v24  ;;  %v560_v12 = vand.u32 4294901760, %v559_v8  ;;  %v5430_v15 = vand.u32 4294901760, %v4887_v11  ;;  %v5438_v2 = vand.u32 4294901760, %v4939_v0  ;;  %v4946_v8 = vsub.f32 %v4719_v30, %v377_v34  ;;  %v238_v34 = vpop.permute.xlu1 %237 }
  0xe9   :  { %v4068_v19 = vpack.c.bf16 %v221_v17, %v220_v18  ;;  %v573_v17 = vsub.f32 %v4885_v10, %v5431_v14  ;;  %v4951_v9 = vsub.f32 %v4724_v31, %v380_v35  ;;  %v503_v25 = vsub.f32 %v4934_v27, %v5439_v1 }
  0xea   :  { %v4891_v16 = vpack.c.bf16 %v567_v13, %v560_v12  ;;  %v580_v18 = vsub.f32 %v4887_v11, %v5430_v15  ;;  %v510_v28 = vsub.f32 %v4939_v0, %v5438_v2  ;;  %v5437_v29 = vand.u32 4294901760, %v4946_v8  ;;  %v233_v13 = vpop.permute.xlu0 %232 }
  0xeb   :  { %4069 = vmatprep.subr.bf16.mxu1 %v4068_v19  ;;  %4103 = vmatpush3.bf16.msra.mxu0 %v4857_v24  ;;  %v5436_v32 = vand.u32 4294901760, %v4951_v9  ;;  %v4964_v30 = vsub.f32 %v4745_v37, %v383_v40  ;;  %v4969_v31 = vsub.f32 %v4750_v38, %v386_v41  ;;  %v504_v35 = vand.u32 4294901760, %v503_v25 }
  0xec   :  { %4071 = vmatpush3.bf16.msra.mxu1 %v4068_v19  ;;  %4105 = vmatprep.subr.bf16.mxu0 %v4869_v3  ;;  %v4899_v19 = vsub.f32 %v362_v60, %v407_v62  ;;  %v4917_v60 = vpack.c.bf16 %v4843_v59, %v4838_v58  ;;  %v4925_v62 = vpack.c.bf16 %v4887_v11, %v4885_v10  ;;  %v511_v12 = vand.u32 4294901760, %v510_v28  ;;  %v248_v28 = vpop.permute.xlu1 %247 }
  0xed   :  { %4265 = vmatprep.subr.bf16.mxu1 %v4731_v33  ;;  %v5435_v40 = vand.u32 4294901760, %v4964_v30  ;;  %v5434_v38 = vand.u32 4294901760, %v4969_v31  ;;  %v5022_v15 = vsub.f32 %v4765_v42, %v389_v45 }
  0xee   :  { %5457 = vst [vmem:[#allocation7_spill] sm:$0xff] %v4899_v19  ;;  %v5429_v48 = vand.u32 4294901760, %v4899_v19 }
  0xef   :  { %3499 = vmatmul.mubr.msk.f32.vlgmr.msra.gmra.mrb[0].mxu1 %vm250_vm1, %v223_v20  ;;  %v4901_v20 = vsub.f32 %v363_v61, %v410_v23  ;;  %v4921_v61 = vpack.c.bf16 %v4875_v5, %v4873_v4 }
  0xf0   :  { %3501 = vmatprep.mubr.msk.f32.mxu1 %vm250_vm1, %v224_v21  ;;  %4267 = vmatpush3.bf16.msra.mxu1 %v4731_v33  ;;  %v574_v21 = vand.u32 4294901760, %v573_v17  ;;  %v587_v51 = vsub.f32 %v4899_v19, %v5429_v48  ;;  %v4974_v17 = vsub.f32 %v4946_v8, %v5437_v29 }
  0xf1   :  { %4269 = vmatprep.subr.bf16.mxu1 %v4739_v36  ;;  %5458 = vst [vmem:[#allocation8_spill] sm:$0xff] %v4901_v20  ;;  %v5428_v49 = vand.u32 4294901760, %v4901_v20  ;;  %v4929_v23 = vpack.c.bf16 %v4901_v20, %v4899_v19 }
  0xf2   :  { %v588_v54 = vand.u32 4294901760, %v587_v51  ;;  %v4987_v51 = vpack.c.bf16 %v511_v12, %v504_v35  ;;  %v5004_v35 = vsub.f32 %v4964_v30, %v5435_v40  ;;  %v5009_v12 = vsub.f32 %v4969_v31, %v5434_v38 }
  0xf3   :  { %3502 = vmatmul.mubr.msk.f32.gmra.mrb[2].mxu1 %vm250_vm1, %v225_v22  ;;  %v581_v22 = vand.u32 4294901760, %v580_v18  ;;  %v594_v53 = vsub.f32 %v4901_v20, %v5428_v49  ;;  %v4979_v18 = vsub.f32 %v4951_v9, %v5436_v32  ;;  %v5035_v38 = vsub.f32 %v4770_v43, %v392_v46 }
  0xf4   :  { %4271 = vmatpush3.bf16.msra.mxu1 %v4739_v36 }
  0xf5   :  { %4273 = vmatprep.subr.bf16.mxu1 %v4758_v39  ;;  %v4905_v50 = vpack.c.bf16 %v581_v22, %v574_v21  ;;  %v595_v55 = vand.u32 4294901760, %v594_v53  ;;  %v525_v25 = vand.u32 4294901760, %v4979_v18  ;;  %v551_v11 = vand.u32 4294901760, %v5035_v38 }
  0xf7   :  { %v4913_v56 = vpack.c.bf16 %v595_v55, %v588_v54  ;;  %v518_v55 = vand.u32 4294901760, %v4974_v17  ;;  %v243_v17 = vpop.permute.xlu0 %242 }
  0xf8   :  { %4275 = vmatpush3.bf16.msra.mxu1 %v4758_v39 }
  0xf9   :  { %4277 = vmatprep.subr.bf16.mxu1 %v4778_v44  ;;  %v4112_v10 = vpack.c.bf16 %v525_v25, %v518_v55  ;;  %v5463_v55 = vand.u32 4294901760, %v5022_v15  ;;  %v552_v25 = vsub.f32 %v5035_v38, %v551_v11 }
  0xfc   :  { %4279 = vmatpush3.bf16.msra.mxu1 %v4778_v44 }
  0xfd   :  { %4281 = vmatprep.subr.bf16.mxu1 %v4788_v47 }
 0x100   :  { %4283 = vmatpush3.bf16.msra.mxu1 %v4788_v47 }
 0x101   :  { %4285 = vmatprep.subr.bf16.mxu1 %v4821_v52 }
 0x104   :  { %4287 = vmatpush3.bf16.msra.mxu1 %v4821_v52 }
 0x105   :  { %4289 = vmatprep.subr.bf16.mxu1 %v4833_v57 }
 0x108   :  { %4291 = vmatpush3.bf16.msra.mxu1 %v4833_v57 }
 0x109   :  { %4293 = vmatprep.subr.bf16.mxu1 %v4857_v24 }
 0x10c   :  { %4295 = vmatpush3.bf16.msra.mxu1 %v4857_v24 }
 0x10d   :  { %4297 = vmatprep.subr.bf16.mxu1 %v4869_v3 }
 0x1c2   :  { %v3500_v37 = vpop.f32.mrb[0].mxu1 }
 0x1c3   :  { %v4983_v41 = vadd.f32 %v3500_v37, %v238_v34  ;;  %v329_v21 = vpop.f32.mrb[1].mxu1 }
 0x1c4   :  { %v4985_v22 = vadd.f32 %v329_v21, %v233_v13 }
 0x1c5   :  { %5459 = vst [vmem:[#allocation9_spill] sm:$0xff] %v4983_v41  ;;  %v4990_v53 = vand.u32 4294901760, %v4983_v41  ;;  %v1135_v54 = vmul.f32 %v4983_v41, %v4983_v41 }
 0x1c6   :  { %5460 = vst [vmem:[#allocation10_spill] sm:$0xff] %v4985_v22  ;;  %v4997_v49 = vand.u32 4294901760, %v4985_v22  ;;  %v1134_v34 = vmul.f32 %v4985_v22, %v4985_v22  ;;  %v3503_v13 = vpop.f32.mrb[2].mxu1 }
 0x1c7   :  { %v5013_v18 = vsub.f32 %v4983_v41, %v4990_v53  ;;  %v5015_v37 = vand.u32 4294901760, %v1135_v54  ;;  %v5017_v21 = vadd.f32 %v3503_v13, %v248_v28  ;;  %v339_v48 = vpop.f32.mrb[3].mxu1 }
 0x1c8   :  { %v5026_v14 = vsub.f32 %v4985_v22, %v4997_v49  ;;  %v5028_v7 = vand.u32 4294901760, %v1134_v34  ;;  %v5030_v6 = vadd.f32 %v339_v48, %v243_v17 }
 0x1c9   :  { %5461 = vst [vmem:[#allocation11_spill] sm:$0xff] %v5017_v21  ;;  %v5442_v28 = vand.u32 4294901760, %v5013_v18  ;;  %v5039_v13 = vsub.f32 %v1135_v54, %v5015_v37  ;;  %v5042_v42 = vand.u32 4294901760, %v5017_v21  ;;  %v1137_v45 = vmul.f32 %v5017_v21, %v5017_v21 }
 0x1ca   :  { %5462 = vst [vmem:[#allocation12_spill] sm:$0xff] %v5030_v6  ;;  %v5047_v40 = vand.u32 4294901760, %v5030_v6  ;;  %v1136_v48 = vmul.f32 %v5030_v6, %v5030_v6  ;;  %v5447_v43 = vand.u32 4294901760, %v5026_v14  ;;  %v5053_v46 = vsub.f32 %v1134_v34, %v5028_v7 }
 0x1cb   :  { %v5057_v54 = vsub.f32 %v5017_v21, %v5042_v42  ;;  %v5059_v17 = vand.u32 4294901760, %v1137_v45  ;;  %v458_v32 = vsub.f32 %v5013_v18, %v5442_v28  ;;  %v5450_v29 = vand.u32 4294901760, %v5039_v13 }
 0x1cc   :  { %v5067_v2 = vsub.f32 %v5030_v6, %v5047_v40  ;;  %v5069_v1 = vand.u32 4294901760, %v1136_v48  ;;  %v448_v34 = vsub.f32 %v5026_v14, %v5447_v43  ;;  %v5452_v63 = vand.u32 4294901760, %v5053_v46 }
 0x1cd   :  { %v1232_v26 = vsub.f32 %v5039_v13, %v5450_v29  ;;  %v5454_v28 = vand.u32 4294901760, %v5057_v54  ;;  %v5080_v21 = vsub.f32 %v1137_v45, %v5059_v17  ;;  %v459_v19 = vand.u32 4294901760, %v458_v32 }
 0x1ce   :  { %v449_v22 = vand.u32 4294901760, %v448_v34  ;;  %v1222_v41 = vsub.f32 %v5053_v46, %v5452_v63  ;;  %v467_v43 = vand.u32 4294901760, %v5067_v2  ;;  %v5088_v20 = vsub.f32 %v1136_v48, %v5069_v1 }
 0x1cf   :  { %v478_v29 = vsub.f32 %v5057_v54, %v5454_v28  ;;  %v1251_v45 = vand.u32 4294901760, %v5080_v21  ;;  %v1233_v48 = vand.u32 4294901760, %v1232_v26  ;;  %v539_v26 = vand.u32 4294901760, %v5009_v12 }
 0x1d0   :  { %3536 = vmatprep.mubr.f32.mxu0 %v449_v22  ;;  %v1223_v34 = vand.u32 4294901760, %v1222_v41  ;;  %v468_v63 = vsub.f32 %v5067_v2, %v467_v43  ;;  %v1241_v6 = vand.u32 4294901760, %v5088_v20  ;;  %v532_v22 = vand.u32 4294901760, %v5004_v35 }
 0x1d1   :  { %3537 = vmatmul.mubr.f32.vlgmr.msra.gmra.mrb[8].mxu0 %v459_v19  ;;  %v1252_v41 = vsub.f32 %v5080_v21, %v1251_v45  ;;  %v479_v19 = vand.u32 4294901760, %v478_v29 }
 0x1d2   :  { %4107 = vmatpush3.bf16.msra.mxu0 %v4869_v3  ;;  %3764 = vmatprep.mubr.f32.mxu1 %v1223_v34  ;;  %v469_v32 = vand.u32 4294901760, %v468_v63  ;;  %v1242_v28 = vsub.f32 %v5088_v20, %v1241_v6  ;;  %v545_v63 = vsub.f32 %v5022_v15, %v5463_v55  ;;  %v4116_v35 = vpack.c.bf16 %v539_v26, %v532_v22 }
 0x1d3   :  { %3765 = vmatmul.mubr.f32.vlgmr.msra.gmra.mrb[4].mxu1 %v1233_v48  ;;  %4109 = vmatprep.subr.bf16.mxu0 %v4987_v51  ;;  %v1253_v29 = vand.u32 4294901760, %v1252_v41  ;;  %v553_v48 = vand.u32 4294901760, %v552_v25  ;;  %v5486_v41 = vld [vmem:[#allocation8_spill] sm:$0xff] }
 0x1d4   :  { %4299 = vmatpush3.bf16.msra.mxu1 %v4869_v3  ;;  %3539 = vmatprep.mubr.f32.mxu0 %v469_v32  ;;  %v1243_v34 = vand.u32 4294901760, %v1242_v28  ;;  %v546_v12 = vand.u32 4294901760, %v545_v63  ;;  %v5469_v28 = vand.u32 4294901760, %v4939_v0  ;;  %v5470_v32 = vand.u32 4294901760, %v5013_v18 }
 0x1d5   :  { %3540 = vmatmul.mubr.f32.gmra.mrb[10].mxu0 %v479_v19  ;;  %4301 = vmatprep.subr.bf16.mxu1 %v4987_v51 }
 0x1d6   :  { %4111 = vmatpush3.bf16.msra.mxu0 %v4987_v51  ;;  %3574 = vmatprep.mubr.f32.mxu0 %v4997_v49  ;;  %v4120_v3 = vpack.c.bf16 %v553_v48, %v546_v12 }
 0x1d7   :  { %3767 = vmatprep.mubr.f32.mxu1 %v1243_v34  ;;  %4113 = vmatprep.subr.bf16.mxu0 %v4112_v10 }
 0x1d8   :  { %3768 = vmatmul.mubr.f32.gmra.mrb[6].mxu1 %v1253_v29 }
 0x1d9   :  { %4303 = vmatpush3.bf16.msra.mxu1 %v4987_v51  ;;  %3802 = vmatprep.mubr.f32.mxu1 %v5028_v7  ;;  %v5468_v51 = vand.u32 4294901760, %v4934_v27 }
 0x1da   :  { %4115 = vmatpush3.bf16.msra.mxu0 %v4112_v10  ;;  %4305 = vmatprep.subr.bf16.mxu1 %v4112_v10 }
 0x1db   :  { %4117 = vmatprep.subr.bf16.mxu0 %v4116_v35 }
 0x1dd   :  { %4307 = vmatpush3.bf16.msra.mxu1 %v4112_v10  ;;  %v4140_v10 = vpack.c.bf16 %v4939_v0, %v4934_v27  ;;  %v5473_v27 = vand.u32 4294901760, %v4951_v9 }
 0x1de   :  { %4119 = vmatpush3.bf16.msra.mxu0 %v4116_v35  ;;  %4309 = vmatprep.subr.bf16.mxu1 %v4116_v35 }
 0x1df   :  { %4121 = vmatprep.subr.bf16.mxu0 %v4120_v3 }
 0x1e1   :  { %4311 = vmatpush3.bf16.msra.mxu1 %v4116_v35 }
 0x1e2   :  { %4123 = vmatpush3.bf16.msra.mxu0 %v4120_v3  ;;  %4313 = vmatprep.subr.bf16.mxu1 %v4120_v3 }
 0x1e3   :  { %4125 = vmatprep.subr.bf16.mxu0 %v4891_v16 }
 0x1e5   :  { %4315 = vmatpush3.bf16.msra.mxu1 %v4120_v3 }
 0x1e6   :  { %4127 = vmatpush3.bf16.msra.mxu0 %v4891_v16  ;;  %4317 = vmatprep.subr.bf16.mxu1 %v4891_v16 }
 0x1e7   :  { %4129 = vmatprep.subr.bf16.mxu0 %v4905_v50 }
 0x1e9   :  { %4319 = vmatpush3.bf16.msra.mxu1 %v4891_v16  ;;  %v4144_v16 = vpack.c.bf16 %v4951_v9, %v4946_v8 }
 0x1ea   :  { %4131 = vmatpush3.bf16.msra.mxu0 %v4905_v50  ;;  %4321 = vmatprep.subr.bf16.mxu1 %v4905_v50 }
 0x1eb   :  { %4133 = vmatprep.subr.bf16.mxu0 %v4913_v56 }
 0x1ed   :  { %4323 = vmatpush3.bf16.msra.mxu1 %v4905_v50  ;;  %v4148_v50 = vpack.c.bf16 %v4969_v31, %v4964_v30 }
 0x1ee   :  { %4135 = vmatpush3.bf16.msra.mxu0 %v4913_v56  ;;  %4325 = vmatprep.subr.bf16.mxu1 %v4913_v56 }
 0x1ef   :  { %4137 = vmatprep.subr.bf16.mxu0 %v4917_v60 }
 0x1f1   :  { %4327 = vmatpush3.bf16.msra.mxu1 %v4913_v56  ;;  %3575 = vmatmul.mubr.f32.vlgmr.msra.gmra.mrb[8].mxu0 %v4990_v53  ;;  %v4152_v56 = vpack.c.bf16 %v5035_v38, %v5022_v15 }
 0x1f2   :  { %3577 = vmatprep.mubr.f32.mxu0 %v5047_v40  ;;  %4139 = vmatpush3.bf16.msra.mxu0 %v4917_v60 }
 0x1f3   :  { %4329 = vmatprep.subr.bf16.mxu1 %v4917_v60  ;;  %4141 = vmatprep.subr.bf16.mxu0 %v4140_v10 }
 0x1f4   :  { %3803 = vmatmul.mubr.f32.vlgmr.msra.gmra.mrb[4].mxu1 %v5015_v37 }
 0x1f5   :  { %3805 = vmatprep.mubr.f32.mxu1 %v5069_v1  ;;  %4331 = vmatpush3.bf16.msra.mxu1 %v4917_v60  ;;  %v5464_v60 = vand.u32 4294901760, %v5026_v14 }
 0x1f6   :  { %3578 = vmatmul.mubr.f32.gmra.mrb[10].mxu0 %v5042_v42  ;;  %4333 = vmatprep.subr.bf16.mxu1 %v4140_v10 }
 0x1f7   :  { %4143 = vmatpush3.bf16.msra.mxu0 %v4140_v10  ;;  %3612 = vmatprep.mubr.f32.mxu0 %v5026_v14  ;;  %v5466_v14 = vand.u32 4294901760, %v4838_v58  ;;  %v5471_v58 = vand.u32 4294901760, %v5039_v13 }
 0x1f8   :  { %3806 = vmatmul.mubr.f32.gmra.mrb[6].mxu1 %v5059_v17  ;;  %4145 = vmatprep.subr.bf16.mxu0 %v4144_v16 }
 0x1f9   :  { %4335 = vmatpush3.bf16.msra.mxu1 %v4140_v10  ;;  %3840 = vmatprep.mubr.f32.mxu1 %v5053_v46 }
 0x1fa   :  { %4337 = vmatprep.subr.bf16.mxu1 %v4144_v16 }
 0x1fb   :  { %4147 = vmatpush3.bf16.msra.mxu0 %v4144_v16 }
 0x1fc   :  { %4149 = vmatprep.subr.bf16.mxu0 %v4148_v50 }
 0x1fd   :  { %4339 = vmatpush3.bf16.msra.mxu1 %v4144_v16 }
 0x1fe   :  { %4341 = vmatprep.subr.bf16.mxu1 %v4148_v50 }
 0x1ff   :  { %4151 = vmatpush3.bf16.msra.mxu0 %v4148_v50 }
 0x200   :  { %4153 = vmatprep.subr.bf16.mxu0 %v4152_v56 }
 0x201   :  { %4343 = vmatpush3.bf16.msra.mxu1 %v4148_v50 }
 0x202   :  { %4345 = vmatprep.subr.bf16.mxu1 %v4152_v56 }
 0x203   :  { %4155 = vmatpush3.bf16.msra.mxu0 %v4152_v56 }
 0x204   :  { %4157 = vmatprep.subr.bf16.mxu0 %v4921_v61 }
 0x205   :  { %4347 = vmatpush3.bf16.msra.mxu1 %v4152_v56 }
 0x206   :  { %4349 = vmatprep.subr.bf16.mxu1 %v4921_v61 }
 0x207   :  { %4159 = vmatpush3.bf16.msra.mxu0 %v4921_v61 }
 0x208   :  { %4161 = vmatprep.subr.bf16.mxu0 %v4925_v62 }
 0x209   :  { %4351 = vmatpush3.bf16.msra.mxu1 %v4921_v61  ;;  %v5465_v61 = vand.u32 4294901760, %v5053_v46  ;;  %v4204_v46 = vpack.c.bf16 %v5469_v28, %v5468_v51 }
 0x20a   :  { %4353 = vmatprep.subr.bf16.mxu1 %v4925_v62 }
 0x20b   :  { %4163 = vmatpush3.bf16.msra.mxu0 %v4925_v62 }
 0x20c   :  { %4165 = vmatprep.subr.bf16.mxu0 %v4929_v23 }
 0x20d   :  { %4355 = vmatpush3.bf16.msra.mxu1 %v4925_v62  ;;  %v5467_v62 = vand.u32 4294901760, %v4843_v59  ;;  %v5472_v59 = vand.u32 4294901760, %v4946_v8  ;;  %v5476_v8 = vand.u32 4294901760, %v4969_v31  ;;  %v5479_v31 = vand.u32 4294901760, %v4875_v5 }
 0x20e   :  { %4357 = vmatprep.subr.bf16.mxu1 %v4929_v23 }
 0x20f   :  { %4167 = vmatpush3.bf16.msra.mxu0 %v4929_v23  ;;  %v4208_v0 = vpack.c.bf16 %v5473_v27, %v5472_v59 }
 0x210   :  { %4169 = vmatprep.subr.bf16.mxu0 %v4731_v33 }
 0x211   :  { %4359 = vmatpush3.bf16.msra.mxu1 %v4929_v23  ;;  %v4200_v23 = vpack.c.bf16 %v5467_v62, %v5466_v14 }
 0x212   :  { %3613 = vmatmul.mubr.f32.vlgmr.msra.gmra.mrb[8].mxu0 %v5013_v18  ;;  %4361 = vmatprep.subr.bf16.mxu1 %v4731_v33  ;;  %v5474_v18 = vand.u32 4294901760, %v5057_v54 }
 0x213   :  { %3615 = vmatprep.mubr.f32.mxu0 %v5067_v2  ;;  %4171 = vmatpush3.bf16.msra.mxu0 %v4731_v33  ;;  %v5475_v2 = vand.u32 4294901760, %v4964_v30  ;;  %v5478_v30 = vand.u32 4294901760, %v4873_v4  ;;  %v5487_v4 = vand.u32 4294901760, %v5486_v41 }
 0x214   :  { %3841 = vmatmul.mubr.f32.vlgmr.msra.gmra.mrb[4].mxu1 %v5039_v13  ;;  %4173 = vmatprep.subr.bf16.mxu0 %v4739_v36  ;;  %v5480_v13 = vld [vmem:[#allocation5_spill] sm:$0xff] }
 0x215   :  { %3843 = vmatprep.mubr.f32.mxu1 %v5088_v20  ;;  %4363 = vmatpush3.bf16.msra.mxu1 %v4731_v33  ;;  %v4212_v9 = vpack.c.bf16 %v5476_v8, %v5475_v2 }
 0x216   :  { %3616 = vmatmul.mubr.f32.gmra.mrb[10].mxu0 %v5057_v54  ;;  %4365 = vmatprep.subr.bf16.mxu1 %v4739_v36  ;;  %v5482_v54 = vld [vmem:[#allocation6_spill] sm:$0xff] }
 0x217   :  { %4175 = vmatpush3.bf16.msra.mxu0 %v4739_v36  ;;  %3650 = vmatprep.mubr.f32.mxu0 %v5464_v60  ;;  %v5483_v15 = vand.u32 4294901760, %v5482_v54 }
 0x218   :  { %3844 = vmatmul.mubr.f32.gmra.mrb[6].mxu1 %v5080_v21  ;;  %4177 = vmatprep.subr.bf16.mxu0 %v4758_v39  ;;  %v4220_v21 = vpack.c.bf16 %v5479_v31, %v5478_v30 }
 0x219   :  { %4367 = vmatpush3.bf16.msra.mxu1 %v4739_v36  ;;  %3878 = vmatprep.mubr.f32.mxu1 %v5465_v61 }
 0x21a   :  { %4369 = vmatprep.subr.bf16.mxu1 %v4758_v39 }
 0x21b   :  { %4179 = vmatpush3.bf16.msra.mxu0 %v4758_v39 }
 0x21c   :  { %4181 = vmatprep.subr.bf16.mxu0 %v4778_v44 }
 0x21d   :  { %4371 = vmatpush3.bf16.msra.mxu1 %v4758_v39 }
 0x21e   :  { %4373 = vmatprep.subr.bf16.mxu1 %v4778_v44 }
 0x21f   :  { %4183 = vmatpush3.bf16.msra.mxu0 %v4778_v44 }
 0x220   :  { %4185 = vmatprep.subr.bf16.mxu0 %v4788_v47 }
 0x221   :  { %4375 = vmatpush3.bf16.msra.mxu1 %v4778_v44 }
 0x222   :  { %4377 = vmatprep.subr.bf16.mxu1 %v4788_v47 }
 0x223   :  { %4187 = vmatpush3.bf16.msra.mxu0 %v4788_v47 }
 0x224   :  { %4189 = vmatprep.subr.bf16.mxu0 %v4821_v52 }
 0x225   :  { %4379 = vmatpush3.bf16.msra.mxu1 %v4788_v47 }
 0x226   :  { %4381 = vmatprep.subr.bf16.mxu1 %v4821_v52 }
 0x227   :  { %4191 = vmatpush3.bf16.msra.mxu0 %v4821_v52 }
 0x228   :  { %4193 = vmatprep.subr.bf16.mxu0 %v4833_v57 }
 0x229   :  { %4383 = vmatpush3.bf16.msra.mxu1 %v4821_v52 }
 0x22a   :  { %4385 = vmatprep.subr.bf16.mxu1 %v4833_v57 }
 0x22b   :  { %4195 = vmatpush3.bf16.msra.mxu0 %v4833_v57 }
 0x22c   :  { %4197 = vmatprep.subr.bf16.mxu0 %v4857_v24 }
 0x22d   :  { %4387 = vmatpush3.bf16.msra.mxu1 %v4833_v57 }
 0x22e   :  { %4389 = vmatprep.subr.bf16.mxu1 %v4857_v24 }
 0x22f   :  { %4199 = vmatpush3.bf16.msra.mxu0 %v4857_v24 }
 0x230   :  { %4201 = vmatprep.subr.bf16.mxu0 %v4200_v23 }
 0x231   :  { %4391 = vmatpush3.bf16.msra.mxu1 %v4857_v24 }
 0x232   :  { %3651 = vmatmul.mubr.f32.vlgmr.msra.gmra.mrb[8].mxu0 %v5470_v32  ;;  %4393 = vmatprep.subr.bf16.mxu1 %v4200_v23 }
 0x233   :  { %3653 = vmatprep.mubr.f32.mxu0 %v467_v43  ;;  %4203 = vmatpush3.bf16.msra.mxu0 %v4200_v23  ;;  %v5481_v43 = vand.u32 4294901760, %v5480_v13 }
 0x234   :  { %3879 = vmatmul.mubr.f32.vlgmr.msra.gmra.mrb[4].mxu1 %v5471_v58  ;;  %4205 = vmatprep.subr.bf16.mxu0 %v4204_v46 }
 0x235   :  { %3881 = vmatprep.mubr.f32.mxu1 %v1241_v6  ;;  %4395 = vmatpush3.bf16.msra.mxu1 %v4200_v23  ;;  %v5477_v6 = vmov %v5463_v55 }
 0x236   :  { %3654 = vmatmul.mubr.f32.gmra.mrb[10].mxu0 %v5474_v18  ;;  %4397 = vmatprep.subr.bf16.mxu1 %v4204_v46  ;;  %v4216_v20 = vpack.c.bf16 %v551_v11, %v5477_v6  ;;  %v5484_v11 = vld [vmem:[#allocation7_spill] sm:$0xff] }
 0x237   :  { %4207 = vmatpush3.bf16.msra.mxu0 %v4204_v46  ;;  %3688 = vmatprep.mubr.f32.mxu0 %v4997_v49  ;;  %v5485_v38 = vand.u32 4294901760, %v5484_v11 }
 0x238   :  { %3882 = vmatmul.mubr.f32.gmra.mrb[6].mxu1 %v1251_v45  ;;  %4209 = vmatprep.subr.bf16.mxu0 %v4208_v0  ;;  %v4224_v45 = vpack.c.bf16 %v5483_v15, %v5481_v43 }
 0x239   :  { %4399 = vmatpush3.bf16.msra.mxu1 %v4204_v46  ;;  %3916 = vmatprep.mubr.f32.mxu1 %v5028_v7  ;;  %v4228_v22 = vpack.c.bf16 %v5487_v4, %v5485_v38 }
 0x23a   :  { %4401 = vmatprep.subr.bf16.mxu1 %v4208_v0 }
 0x23b   :  { %4211 = vmatpush3.bf16.msra.mxu0 %v4208_v0 }
 0x23c   :  { %4213 = vmatprep.subr.bf16.mxu0 %v4212_v9 }
 0x23d   :  { %4403 = vmatpush3.bf16.msra.mxu1 %v4208_v0 }
 0x23e   :  { %4405 = vmatprep.subr.bf16.mxu1 %v4212_v9 }
 0x23f   :  { %4215 = vmatpush3.bf16.msra.mxu0 %v4212_v9 }
 0x240   :  { %4217 = vmatprep.subr.bf16.mxu0 %v4216_v20 }
 0x241   :  { %4407 = vmatpush3.bf16.msra.mxu1 %v4212_v9 }
 0x242   :  { %4409 = vmatprep.subr.bf16.mxu1 %v4216_v20 }
 0x243   :  { %4219 = vmatpush3.bf16.msra.mxu0 %v4216_v20 }
 0x244   :  { %4221 = vmatprep.subr.bf16.mxu0 %v4220_v21 }
 0x245   :  { %4411 = vmatpush3.bf16.msra.mxu1 %v4216_v20 }
 0x246   :  { %4413 = vmatprep.subr.bf16.mxu1 %v4220_v21 }
 0x247   :  { %4223 = vmatpush3.bf16.msra.mxu0 %v4220_v21 }
 0x248   :  { %4225 = vmatprep.subr.bf16.mxu0 %v4224_v45 }
 0x249   :  { %4415 = vmatpush3.bf16.msra.mxu1 %v4220_v21 }
 0x24a   :  { %4417 = vmatprep.subr.bf16.mxu1 %v4224_v45 }
 0x24b   :  { %4227 = vmatpush3.bf16.msra.mxu0 %v4224_v45 }
 0x24c   :  { %4229 = vmatprep.subr.bf16.mxu0 %v4228_v22 }
 0x24d   :  { %4419 = vmatpush3.bf16.msra.mxu1 %v4224_v45 }
 0x24e   :  { %4421 = vmatprep.subr.bf16.mxu1 %v4228_v22 }
 0x24f   :  { %4231 = vmatpush3.bf16.msra.mxu0 %v4228_v22 }
 0x250   :  { %4233 = vmatprep.subr.bf16.mxu0 %v4731_v33 }
 0x251   :  { %4423 = vmatpush3.bf16.msra.mxu1 %v4228_v22 }
 0x252   :  { %3689 = vmatmul.mubr.f32.vlgmr.msra.gmra.mrb[8].mxu0 %v4990_v53  ;;  %4425 = vmatprep.subr.bf16.mxu1 %v4731_v33 }
 0x253   :  { %3691 = vmatprep.mubr.f32.mxu0 %v5047_v40  ;;  %4235 = vmatpush3.bf16.msra.mxu0 %v4731_v33 }
 0x254   :  { %3917 = vmatmul.mubr.f32.vlgmr.msra.gmra.mrb[4].mxu1 %v5015_v37  ;;  %4237 = vmatprep.subr.bf16.mxu0 %v4739_v36 }
 0x255   :  { %3919 = vmatprep.mubr.f32.mxu1 %v5069_v1  ;;  %4427 = vmatpush3.bf16.msra.mxu1 %v4731_v33  ;;  %v1932_v33 = vld [vmem:[%s5426_s6] sm:$0xff]  ;;  %s4575_s6 = smov [#allocation2]  }
 0x256   :  { %3692 = vmatmul.mubr.f32.gmra.mrb[10].mxu0 %v5042_v42  ;;  %4429 = vmatprep.subr.bf16.mxu1 %v4739_v36  ;;  %s3124_s28 = sshll.u32 %s4575_s6, 4  ;;  %s3125_s28 = int_to_ptr.vmem [resolvable:$true] %s3124_s28 }
 0x257   :  { %4239 = vmatpush3.bf16.msra.mxu0 %v4739_v36  ;;  %3726 = vmatprep.mubr.f32.mxu0 %v4997_v49  ;;  %s4550_s29 = scalar_lea.vmem %s3125_s28, 512  ;;  %p4555_p1 = scmp.lt.s32.totalorder %s3125_s28, %s3125_s28 }
 0x258   :  { %3920 = vmatmul.mubr.f32.gmra.mrb[6].mxu1 %v5059_v17  ;;  %4241 = vmatprep.subr.bf16.mxu0 %v4758_v39  ;;  %p4551_p0 = scmp.ne.s32.totalorder %s3125_s28, %s4550_s29  ;;  %p4556_p2 = scmp.lt.s32.totalorder %s4550_s29, %s4550_s29 }
 0x259   :  { %4431 = vmatpush3.bf16.msra.mxu1 %v4739_v36  ;;  %3954 = vmatprep.mubr.f32.mxu1 %v5028_v7  ;;  %v5302_v36 = vand.u32 4294901760, %v1932_v33 }
 0x25a   :  { %4433 = vmatprep.subr.bf16.mxu1 %v4758_v39  ;;  %p4557_p3 = por %p4556_p2, %p4555_p1 }
 0x25b   :  { %4243 = vmatpush3.bf16.msra.mxu0 %v4758_v39 }
 0x25c   :  { %4245 = vmatprep.subr.bf16.mxu0 %v4778_v44  ;;  %p4558_p4 = pnand %p4557_p3, %p4551_p0 }
 0x25d   :  { %4435 = vmatpush3.bf16.msra.mxu1 %v4758_v39  ;;  %v5306_v39 = vsub.f32 %v1932_v33, %v5302_v36 }
 0x25e   :  { %4437 = vmatprep.subr.bf16.mxu1 %v4778_v44 }
 0x25f   :  { %4247 = vmatpush3.bf16.msra.mxu0 %v4778_v44 }
 0x260   :  { %4249 = vmatprep.subr.bf16.mxu0 %v4788_v47 }
 0x261   :  { %4439 = vmatpush3.bf16.msra.mxu1 %v4778_v44  ;;  %v5310_v44 = vand.u32 4294901760, %v5306_v39 }
 0x262   :  { %4441 = vmatprep.subr.bf16.mxu1 %v4788_v47 }
 0x263   :  { %4251 = vmatpush3.bf16.msra.mxu0 %v4788_v47 }
 0x264   :  { %4253 = vmatprep.subr.bf16.mxu0 %v4821_v52 }
 0x265   :  { %4443 = vmatpush3.bf16.msra.mxu1 %v4788_v47  ;;  %v2055_v47 = vsub.f32 %v5306_v39, %v5310_v44 }
 0x266   :  { %4445 = vmatprep.subr.bf16.mxu1 %v4821_v52 }
 0x267   :  { %4255 = vmatpush3.bf16.msra.mxu0 %v4821_v52 }
 0x268   :  { %4257 = vmatprep.subr.bf16.mxu0 %v4833_v57 }
 0x269   :  { %4447 = vmatpush3.bf16.msra.mxu1 %v4821_v52  ;;  %v2056_v52 = vand.u32 4294901760, %v2055_v47 }
 0x26a   :  { %4449 = vmatprep.subr.bf16.mxu1 %v4833_v57 }
 0x26b   :  { %4259 = vmatpush3.bf16.msra.mxu0 %v4833_v57 }
 0x26c   :  { %4261 = vmatprep.subr.bf16.mxu0 %v4857_v24 }
 0x26d   :  { %4451 = vmatpush3.bf16.msra.mxu1 %v4833_v57 }
 0x26e   :  { %4453 = vmatprep.subr.bf16.mxu1 %v4857_v24 }
 0x26f   :  { %4263 = vmatpush3.bf16.msra.mxu0 %v4857_v24 }
 0x270   :  { %3960 = vmatprep.subr.mxu0 %v5302_v36 }
 0x271   :  { %4455 = vmatpush3.bf16.msra.mxu1 %v4857_v24 }
 0x272   :  { %3727 = vmatmul.mubr.f32.vlgmr.msra.gmra.mrb[8].mxu0 %v4990_v53  ;;  %4016 = vmatprep.subr.mxu1 %v2056_v52 }
 0x273   :  { %3729 = vmatprep.mubr.f32.mxu0 %v5047_v40  ;;  %3961 = vmatpush3.msra.mxu0 %v5302_v36 }
 0x274   :  { %3955 = vmatmul.mubr.f32.vlgmr.msra.gmra.mrb[4].mxu1 %v5015_v37  ;;  %3968 = vmatprep.subr.mxu0 %v2056_v52 }
 0x275   :  { %3957 = vmatprep.mubr.f32.mxu1 %v5069_v1  ;;  %4017 = vmatpush3.msra.mxu1 %v2056_v52 }
 0x276   :  { %3730 = vmatmul.mubr.f32.gmra.mrb[10].mxu0 %v5042_v42  ;;  %4024 = vmatprep.subr.mxu1 %v5306_v39 }
 0x278   :  { %3958 = vmatmul.mubr.f32.gmra.mrb[6].mxu1 %v5059_v17 }
 0x345   :  { %v3728_v57 = vpop.f32.mrb[8].mxu0 }
 0x346   :  { %v1909_v24 = vmul.f32 0.0625, %v3728_v57  ;;  %v1112_v5 = vpop.f32.mrb[9].mxu0 }
 0x347   :  { %v1908_v7 = vmul.f32 0.0625, %v1112_v5  ;;  %v3956_v49 = vpop.f32.mrb[4].mxu1 }
 0x348   :  { %v1917_v1 = vmul.f32 %v1909_v24, %v1909_v24  ;;  %v1937_v40 = vsel %vm84_vm0, %v1909_v24, 0  ;;  %v1913_v53 = vmul.f32 0.0625, %v3956_v49  ;;  %v1886_v37 = vpop.f32.mrb[5].mxu1 }
 0x349   :  { %v5316_v42 = vand.u32 4294901760, %v1937_v40  ;;  %v1916_v17 = vmul.f32 %v1908_v7, %v1908_v7  ;;  %v1934_v19 = vsel %vm84_vm0, %v1908_v7, 0  ;;  %v1912_v26 = vmul.f32 0.0625, %v1886_v37  ;;  %v3731_v55 = vpop.f32.mrb[10].mxu0 }
 0x34a   :  { %v5319_v63 = vand.u32 4294901760, %v1934_v19  ;;  %v1921_v25 = vsub.f32 %v1913_v53, %v1917_v1  ;;  %v1911_v34 = vmul.f32 0.0625, %v3731_v55  ;;  %v1124_v29 = vpop.f32.mrb[11].mxu0 }
 0x34b   :  { %v5322_v35 = vsub.f32 %v1937_v40, %v5316_v42  ;;  %v1920_v12 = vsub.f32 %v1912_v26, %v1916_v17  ;;  %v1910_v48 = vmul.f32 0.0625, %v1124_v29  ;;  %v3959_v3 = vpop.f32.mrb[6].mxu1 }
 0x34c   :  { %v5325_v10 = vsub.f32 %v1934_v19, %v5319_v63  ;;  %v1925_v16 = vadd.f32 1e-05, %v1921_v25  ;;  %v1919_v50 = vmul.f32 %v1911_v34, %v1911_v34  ;;  %v1943_v56 = vsel %vm84_vm0, %v1911_v34, 0  ;;  %v1898_v60 = vpop.f32.mrb[7].mxu1 }
 0x34d   :  { %v2023_v61 = vand.u32 4294901760, %v5322_v35  ;;  %v1924_v14 = vadd.f32 1e-05, %v1920_v12  ;;  %v5329_v62 = vand.u32 4294901760, %v1943_v56  ;;  %v1918_v23 = vmul.f32 %v1910_v48, %v1910_v48 }
 0x34e   :  { %4542 = vrsqrt.f32 %v1925_v16  ;;  %v1940_v51 = vsel %vm84_vm0, %v1910_v48, 0  ;;  %v1915_v28 = vmul.f32 0.0625, %v3959_v3  ;;  %v1914_v46 = vmul.f32 0.0625, %v1898_v60 }
 0x34f   :  { %4544 = vrsqrt.f32 %v1924_v14  ;;  %v5333_v32 = vsub.f32 %v1943_v56, %v5329_v62  ;;  %v5335_v58 = vand.u32 4294901760, %v1940_v51  ;;  %v2013_v0 = vand.u32 4294901760, %v5325_v10  ;;  %v5488_v56 = vld [vmem:[#allocation9_spill] sm:$0xff] }
 0x350   :  { %v1923_v59 = vsub.f32 %v1915_v28, %v1919_v50  ;;  %v1922_v27 = vsub.f32 %v1914_v46, %v1918_v23  ;;  %v2024_v18 = vsub.f32 %v5322_v35, %v2023_v61 }
 0x351   :  { %v5342_v2 = vsub.f32 %v1940_v51, %v5335_v58  ;;  %v2043_v8 = vand.u32 4294901760, %v5333_v32  ;;  %v2014_v20 = vsub.f32 %v5325_v10, %v2013_v0 }
 0x352   :  { %v1927_v9 = vadd.f32 1e-05, %v1923_v59  ;;  %v1926_v6 = vadd.f32 1e-05, %v1922_v27  ;;  %v2025_v21 = vand.u32 4294901760, %v2024_v18  ;;  %v5491_v18 = vld [vmem:[#allocation12_spill] sm:$0xff] }
 0x353   :  { %v2033_v30 = vand.u32 4294901760, %v5342_v2  ;;  %v2015_v31 = vand.u32 4294901760, %v2014_v20  ;;  %v2044_v43 = vsub.f32 %v5333_v32, %v2043_v8 }
 0x354   :  { %4546 = vrsqrt.f32 %v1927_v9 }
 0x355   :  { %4548 = vrsqrt.f32 %v1926_v6  ;;  %v2034_v13 = vsub.f32 %v5342_v2, %v2033_v30  ;;  %3962 = vmatprep.mubr.f32.mxu0 %v2015_v31  ;;  %v2045_v11 = vand.u32 4294901760, %v2044_v43 }
 0x356   :  { %3963 = vmatmul.mubr.f32.vlgmr.msra.gmra.mrb[12].mxu0 %v2025_v21 }
 0x357   :  { %v2035_v54 = vand.u32 4294901760, %v2034_v13  ;;  %3969 = vmatpush3.msra.mxu0 %v2056_v52 }
 0x358   :  { %v4543_v15 = vpop.eup %4542  ;;  %3976 = vmatprep.subr.mxu0 %v5306_v39 }
 0x359   :  { %v4545_v45 = vpop.eup %4544  ;;  %3965 = vmatprep.mubr.f32.mxu0 %v2035_v54  ;;  %v2524_v38 = vsel %vm84_vm0, %v4543_v15, 0 }
 0x35a   :  { %v2521_v41 = vsel %vm84_vm0, %v4545_v45, 0  ;;  %3966 = vmatmul.mubr.f32.gmra.mrb[14].mxu0 %v2045_v11  ;;  %v5357_v22 = vand.u32 4294901760, %v2524_v38 }
 0x35b   :  { %v5354_v4 = vand.u32 4294901760, %v2521_v41  ;;  %3970 = vmatprep.mubr.f32.mxu0 %v5319_v63 }
 0x35d   :  { %4018 = vmatprep.mubr.f32.mxu1 %v5354_v4  ;;  %v2599_v7 = vsub.f32 %v2521_v41, %v5354_v4 }
 0x35e   :  { %v4547_v33 = vpop.eup %4546  ;;  %4019 = vmatmul.mubr.f32.vlgmr.msra.gmra.mrb[8].mxu1 %v5357_v22  ;;  %3971 = vmatmul.mubr.f32.vlgmr.msra.gmra.mrb[12].mxu0 %v5316_v42 }
 0x35f   :  { %v4549_v47 = vpop.eup %4548  ;;  %v2530_v52 = vsel %vm84_vm0, %v4547_v33, 0  ;;  %4025 = vmatpush3.msra.mxu1 %v5306_v39  ;;  %3977 = vmatpush3.msra.mxu0 %v5306_v39  ;;  %v2609_v39 = vsub.f32 %v2524_v38, %v5357_v22  ;;  %v2600_v40 = vand.u32 4294901760, %v2599_v7 }
 0x360   :  { %3973 = vmatprep.mubr.f32.mxu0 %v5335_v58  ;;  %v2527_v57 = vsel %vm84_vm0, %v4549_v47, 0  ;;  %3984 = vmatprep.subr.mxu0 %v5302_v36  ;;  %v2628_v5 = vand.u32 4294901760, %v2530_v52 }
 0x361   :  { %v2618_v24 = vand.u32 4294901760, %v2527_v57  ;;  %4032 = vmatprep.subr.mxu1 %v5302_v36  ;;  %v2610_v53 = vand.u32 4294901760, %v2609_v39 }
 0x362   :  { %3974 = vmatmul.mubr.f32.gmra.mrb[14].mxu0 %v5329_v62  ;;  %v2629_v1 = vsub.f32 %v2530_v52, %v2628_v5 }
 0x363   :  { %4021 = vmatprep.mubr.f32.mxu1 %v2618_v24  ;;  %3978 = vmatprep.mubr.f32.mxu0 %v5325_v10  ;;  %v2619_v49 = vsub.f32 %v2527_v57, %v2618_v24  ;;  %v2611_v19 = vsub.f32 %v2609_v39, %v2610_v53 }
 0x364   :  { %4022 = vmatmul.mubr.f32.gmra.mrb[10].mxu1 %v2628_v5  ;;  %v2630_v17 = vand.u32 4294901760, %v2629_v1 }
 0x365   :  { %4026 = vmatprep.mubr.f32.mxu1 %v2599_v7  ;;  %v2620_v37 = vand.u32 4294901760, %v2619_v49 }
 0x366   :  { %3979 = vmatmul.mubr.f32.vlgmr.msra.gmra.mrb[12].mxu0 %v5322_v35  ;;  %v2631_v25 = vsub.f32 %v2629_v1, %v2630_v17 }
 0x367   :  { %3985 = vmatpush3.msra.mxu0 %v5302_v36  ;;  %3981 = vmatprep.mubr.f32.mxu0 %v5342_v2  ;;  %v2621_v55 = vsub.f32 %v2619_v49, %v2620_v37 }
 0x368   :  { %4027 = vmatmul.mubr.f32.vlgmr.msra.gmra.mrb[8].mxu1 %v2609_v39  ;;  %3992 = vmatprep.subr.mxu0 %v5310_v44 }
 0x369   :  { %4029 = vmatprep.mubr.f32.mxu1 %v2619_v49  ;;  %4033 = vmatpush3.msra.mxu1 %v5302_v36  ;;  %v2622_v34 = vand.u32 4294901760, %v2621_v55 }
 0x36a   :  { %3982 = vmatmul.mubr.f32.gmra.mrb[14].mxu0 %v5333_v32  ;;  %4040 = vmatprep.subr.mxu1 %v5310_v44 }
 0x36b   :  { %3986 = vmatprep.mubr.f32.mxu0 %v2013_v0 }
 0x36c   :  { %4030 = vmatmul.mubr.f32.gmra.mrb[10].mxu1 %v2629_v1 }
 0x36d   :  { %4034 = vmatprep.mubr.f32.mxu1 %v2600_v40 }
 0x36e   :  { %3987 = vmatmul.mubr.f32.vlgmr.msra.gmra.mrb[12].mxu0 %v2023_v61 }
 0x36f   :  { %3993 = vmatpush3.msra.mxu0 %v5310_v44  ;;  %3989 = vmatprep.mubr.f32.mxu0 %v2033_v30 }
 0x370   :  { %4035 = vmatmul.mubr.f32.vlgmr.msra.gmra.mrb[8].mxu1 %v2610_v53  ;;  %4000 = vmatprep.subr.mxu0 %v5302_v36 }
 0x371   :  { %4037 = vmatprep.mubr.f32.mxu1 %v2620_v37  ;;  %4041 = vmatpush3.msra.mxu1 %v5310_v44  ;;  %v2601_v44 = vsub.f32 %v2599_v7, %v2600_v40 }
 0x372   :  { %3990 = vmatmul.mubr.f32.gmra.mrb[14].mxu0 %v2043_v8  ;;  %4048 = vmatprep.subr.mxu1 %v5302_v36 }
 0x373   :  { %3994 = vmatprep.mubr.f32.mxu0 %v5319_v63  ;;  %v2602_v26 = vand.u32 4294901760, %v2601_v44 }
 0x374   :  { %4038 = vmatmul.mubr.f32.gmra.mrb[10].mxu1 %v2630_v17 }
 0x375   :  { %4042 = vmatprep.mubr.f32.mxu1 %v5354_v4 }
 0x376   :  { %3995 = vmatmul.mubr.f32.vlgmr.msra.gmra.mrb[12].mxu0 %v5316_v42 }
 0x377   :  { %4001 = vmatpush3.msra.mxu0 %v5302_v36  ;;  %3997 = vmatprep.mubr.f32.mxu0 %v5335_v58 }
 0x378   :  { %4043 = vmatmul.mubr.f32.vlgmr.msra.gmra.mrb[8].mxu1 %v5357_v22  ;;  %4008 = vmatprep.subr.mxu0 %v5302_v36 }
 0x379   :  { %4045 = vmatprep.mubr.f32.mxu1 %v2618_v24  ;;  %4049 = vmatpush3.msra.mxu1 %v5302_v36 }
 0x37a   :  { %3998 = vmatmul.mubr.f32.gmra.mrb[14].mxu0 %v5329_v62 }
 0x37b   :  { %4002 = vmatprep.mubr.f32.mxu0 %v5319_v63  ;;  %v2612_v63 = vand.u32 4294901760, %v2611_v19 }
 0x37c   :  { %4046 = vmatmul.mubr.f32.gmra.mrb[10].mxu1 %v2628_v5 }
 0x37d   :  { %4050 = vmatprep.mubr.f32.mxu1 %v5354_v4 }
 0x37e   :  { %4003 = vmatmul.mubr.f32.vlgmr.msra.gmra.mrb[12].mxu0 %v5316_v42  ;;  %v2632_v42 = vand.u32 4294901760, %v2631_v25 }
 0x37f   :  { %4009 = vmatpush3.msra.mxu0 %v5302_v36  ;;  %4005 = vmatprep.mubr.f32.mxu0 %v5335_v58  ;;  %v5490_v58 = vld [vmem:[#allocation11_spill] sm:$0xff] }
 0x380   :  { %4051 = vmatmul.mubr.f32.vlgmr.msra.gmra.mrb[8].mxu1 %v5357_v22 }
 0x381   :  { %4053 = vmatprep.mubr.f32.mxu1 %v2618_v24 }
 0x382   :  { %4006 = vmatmul.mubr.f32.gmra.mrb[14].mxu0 %v5329_v62  ;;  %v5489_v62 = vld [vmem:[#allocation10_spill] sm:$0xff] }
 0x383   :  { %4010 = vmatprep.mubr.f32.mxu0 %v2602_v26 }
 0x384   :  { %4054 = vmatmul.mubr.f32.gmra.mrb[10].mxu1 %v2628_v5 }
 0x386   :  { %4011 = vmatmul.mubr.f32.vlgmr.msra.gmra.mrb[16].mxu0 %v2612_v63 }
 0x387   :  { %4013 = vmatprep.mubr.f32.mxu0 %v2622_v34 }
 0x38a   :  { %4014 = vmatmul.mubr.f32.gmra.mrb[18].mxu0 %v2632_v42 }
 0x451   :  { %v4004_v36 = vpop.f32.mrb[12].mxu0 }
 0x452   :  { %v2498_v29 = vpop.f32.mrb[13].mxu0  ;;  %v3108_v60 = vsub.f32 %v5488_v56, %v4004_v36 }
 0x453   :  { %v4052_v35 = vpop.f32.mrb[8].mxu1  ;;  %v3107_v23 = vsub.f32 %v5489_v62, %v2498_v29 }
 0x454   :  { %v3085_v12 = vpop.f32.mrb[9].mxu1 }
 0x455   :  { %v4007_v48 = vpop.f32.mrb[14].mxu0 }
 0x456   :  { %v2510_v3 = vpop.f32.mrb[15].mxu0  ;;  %v3110_v59 = vsub.f32 %v5490_v58, %v4007_v48 }
 0x457   :  { %v4055_v10 = vpop.f32.mrb[10].mxu1  ;;  %v3109_v2 = vsub.f32 %v5491_v18, %v2510_v3 }
 0x458   :  { %v3097_v16 = vpop.f32.mrb[11].mxu1 }
 0x459   :  { %v4012_v50 = vpop.f32.mrb[16].mxu0 }
 0x45a   :  { %v4456_v61 = vadd.f32 %v4052_v35, %v4012_v50  ;;  %v2604_v14 = vpop.f32.mrb[17].mxu0 }
 0x45b   :  { %v4457_v51 = vadd.f32 %v3085_v12, %v2604_v14 }
 0x45c   :  { %v3112_v28 = vmul.f32 %v4456_v61, %v3108_v60 }
 0x45d   :  { %v3111_v46 = vmul.f32 %v4457_v51, %v3107_v23  ;;  %v4015_v32 = vpop.f32.mrb[18].mxu0 }
 0x45e   :  { %3116 = vst [vmem:[#allocation2 + $0x8] sm:$0xff] %v3112_v28  ;;  %v4458_v27 = vadd.f32 %v4055_v10, %v4015_v32  ;;  %v2624_v0 = vpop.f32.mrb[19].mxu0 }
 0x45f   :  { %3115 = vst [vmem:[#allocation2] sm:$0xff] %v3111_v46  ;;  %v4459_v8 = vadd.f32 %v3097_v16, %v2624_v0 }
 0x460   :  { %v3114_v9 = vmul.f32 %v4458_v27, %v3110_v59 }
 0x461   :  { %v3113_v6 = vmul.f32 %v4459_v8, %v3109_v2 }
 0x462   :  { %3118 = vst [vmem:[#allocation2 + $0x18] sm:$0xff] %v3114_v9 }
 0x463   :  { %3117 = vst [vmem:[#allocation2 + $0x10] sm:$0xff] %v3113_v6 }
 0x464   :  { %4561 = shalt.err (!%p4558_p4)
}
 0x465   :  { %s4562_s0 = scalar_lea.hbm %s5427_s7, 512 }
 0x466   :  { %p4563_p5 = scmp.ne.s32.totalorder %s5427_s7, %s4562_s0  ;;  %p4566_p6 = scmp.lt.u32.totalorder %s4562_s0, %s5427_s7 }
 0x468   :  { %p4568_p7 = pnand %p4566_p6, %p4563_p5 }
 0x46a   :  { %4571 = shalt.err (!%p4568_p7)
}
 0x46b   :  { %s4576_s1 = smov 128   ;;  %s4577_s13 = smov 8  }
 0x46c   :  { %3130 = dma.vmem_to_hbm [thread:$0]  %s3125_s28, 512, %s5427_s7, [#allocation3], %s4576_s1, %s4576_s1, %s4577_s13  }
 0x46d   :  { %4572 = dma.done.wait [#allocation3], 512  }
 0x46e   :  { %4573 = vsyncadd [#allocation3], 4294966784 }
 0x46f   :  { %3134 = vsyncpa [#allocation3], 1 }

</bundles_post_ra>
